<compile_context>
chip_gen: v7x
topology: tpu7x:2x2x1
jax: 0.10.0
libtpu: 0.0.40
codegen_flags: <defaults>
</compile_context>

<pallas_src>
import math

import jax
import jax.numpy as jnp
from jax.experimental import pallas as pl
from jax.experimental.pallas import tpu as pltpu


def _film_kernel(g_ref, b_ref, x_ref, o_ref):
    # g_ref/b_ref: (TR, 1) f32 per-row affine params (broadcast along lanes).
    # x_ref/o_ref: (TR, THW) data tiles (spatial on the lane axis).
    # f32 compute works on every TPU generation (v5e has no bf16 VALU) and is
    # free here: the kernel is purely HBM-bandwidth bound.
    x = x_ref[...].astype(jnp.float32)
    o_ref[...] = (g_ref[...] * x + b_ref[...]).astype(o_ref.dtype)


def _choose_tiles(R: int, HW: int, elem_bytes: int, block_bytes: int):
    """Pick (tr, thw): tr % 8 == 0 (or tr == R), thw % 128 == 0 (or thw == HW)."""
    row_bytes = max(1, HW * elem_bytes)
    if R <= 8 or 8 * row_bytes <= block_bytes:
        # Full rows: each (tr, HW) block is a single contiguous linear DMA.
        thw = HW
        max_rows = max(8, block_bytes // row_bytes)
        if max_rows >= R:
            tr = R                       # whole array fits in one block
        else:
            tr = (max_rows // 8) * 8     # multiple of 8, within byte budget
    else:
        # A single 8-row slab of full rows exceeds the budget: tile lanes.
        # (Case only triggers when HW > block_bytes / (8 * elem) >= thw.)
        thw_budget = block_bytes // (8 * elem_bytes)
        thw = max(128, (thw_budget // 128) * 128)
        tr = R if R <= 8 else 8
    return tr, thw


def film_forward(x: jax.Array, gamma: jax.Array, beta: jax.Array,
                 *, block_bytes: int = 8 << 20) -> jax.Array:
    """FiLM: y = gamma[c] * x[n, c, ...] + beta[c], x of shape (N, C, *spatial)."""
    orig_shape = x.shape
    N, C = orig_shape[0], orig_shape[1]
    HW = int(math.prod(orig_shape[2:])) if x.ndim > 2 else 1
    R = N * C

    # Free view (NCHW is contiguous): no HBM copy.
    x2d = x.reshape(R, HW)

    # Per-row params: row r = n*C + c -> gamma[c] / beta[c]. Tiny HBM traffic.
    g_rows = jnp.tile(gamma.astype(jnp.float32), N).reshape(R, 1)
    b_rows = jnp.tile(beta.astype(jnp.float32), N).reshape(R, 1)

    elem_bytes = x.dtype.itemsize
    tr, thw = _choose_tiles(R, HW, elem_bytes, block_bytes)
    nr = pl.cdiv(R, tr)
    nc = pl.cdiv(HW, thw)

    # x + out blocks, double-buffered (~4x block), plus headroom for params.
    block_b = tr * thw * elem_bytes
    vmem_limit = int(min(4 * block_b + (4 << 20), 56 << 20))
    vmem_limit = max(vmem_limit, 16 << 20)

    out2d = pl.pallas_call(
        _film_kernel,
        out_shape=jax.ShapeDtypeStruct((R, HW), x.dtype),
        grid_spec=pltpu.PrefetchScalarGridSpec(
            num_scalar_prefetch=0,
            grid=(nr, nc),                                   # lane axis innermost
            in_specs=[
                pl.BlockSpec((tr, 1), lambda i, j: (i, 0)),   # gamma rows (resident over j)
                pl.BlockSpec((tr, 1), lambda i, j: (i, 0)),   # beta rows
                pl.BlockSpec((tr, thw), lambda i, j: (i, j)),  # x tile
            ],
            out_specs=pl.BlockSpec((tr, thw), lambda i, j: (i, j)),
        ),
        compiler_params=pltpu.CompilerParams(
            dimension_semantics=("parallel", "parallel"),
            vmem_limit_bytes=vmem_limit,
        ),
    )(g_rows, b_rows, x2d)

    # Free view back to the original shape (no data movement).
    return out2d.reshape(orig_shape)


if __name__ == "__main__":
    # Small shapes consistent with the module's forward (N, C, H, W).
    N, C, H, W = 2, 4, 16, 16
    init_gamma, init_beta = 1.0, 0.0

    key = jax.random.PRNGKey(0)
    x = jax.random.normal(key, (N, C, H, W), dtype=jnp.float32)

    # Deterministic, non-trivial gamma/beta so the per-channel broadcast is exercised.
    gamma = jnp.full((C,), init_gamma, dtype=jnp.float32) + 0.1 * jnp.arange(
        C, dtype=jnp.float32)
    beta = jnp.full((C,), init_beta, dtype=jnp.float32) - 0.05 * jnp.arange(
        C, dtype=jnp.float32)

    y = jax.block_until_ready(film_forward(x, gamma, beta))

    # Pure-JAX reference mirroring the PyTorch broadcast semantics.
    y_ref = gamma.reshape(1, C, 1, 1) * x + beta.reshape(1, C, 1, 1)

    assert y.shape == x.shape and y.dtype == x.dtype
    assert jnp.allclose(y, y_ref, atol=1e-6, rtol=1e-6)
    print("KERNEL_OK")
</pallas_src>

<mosaic_0001>
module attributes {stable_mosaic.version = 11 : i64} {
  func.func @_film_kernel(%arg0: i32, %arg1: i32, %arg2: memref<8x1xf32, #tpu.memory_space<vmem>>, %arg3: memref<8x1xf32, #tpu.memory_space<vmem>>, %arg4: memref<8x256xf32, #tpu.memory_space<vmem>>, %arg5: memref<8x256xf32, #tpu.memory_space<vmem>>) attributes {dimension_semantics = [#tpu.dimension_semantics<parallel>, #tpu.dimension_semantics<parallel>], iteration_bounds = array<i64: 1, 1>, scalar_prefetch = 0 : i64, scratch_operands = 0 : i64, tpu.core_type = #tpu.core_type<tc>, window_params = [{transform_indices = @transform_0, window_bounds = array<i64: 8, 1>}, {transform_indices = @transform_1, window_bounds = array<i64: 8, 1>}, {transform_indices = @transform_2, window_bounds = array<i64: 8, 256>}, {transform_indices = @transform_3, window_bounds = array<i64: 8, 256>}]} {
    %c0 = arith.constant 0 : index
    %c0_0 = arith.constant 0 : index
    %0 = vector.load %arg4[%c0, %c0_0] : memref<8x256xf32, #tpu.memory_space<vmem>>, vector<8x256xf32>
    %c0_1 = arith.constant 0 : index
    %c0_2 = arith.constant 0 : index
    %1 = vector.load %arg2[%c0_1, %c0_2] : memref<8x1xf32, #tpu.memory_space<vmem>>, vector<8x1xf32>
    %2 = vector.broadcast %1 : vector<8x1xf32> to vector<8x256xf32>
    %3 = arith.mulf %2, %0 : vector<8x256xf32>
    %c0_3 = arith.constant 0 : index
    %c0_4 = arith.constant 0 : index
    %4 = vector.load %arg3[%c0_3, %c0_4] : memref<8x1xf32, #tpu.memory_space<vmem>>, vector<8x1xf32>
    %5 = vector.broadcast %4 : vector<8x1xf32> to vector<8x256xf32>
    %6 = arith.addf %3, %5 : vector<8x256xf32>
    %c0_5 = arith.constant 0 : index
    %c0_6 = arith.constant 0 : index
    %7 = vector.load %arg5[%c0_5, %c0_6] : memref<8x256xf32, #tpu.memory_space<vmem>>, vector<8x256xf32>
    tpu.vector_store %arg5[%c0_5, %c0_6], %6 {strides = array<i32>} : memref<8x256xf32, #tpu.memory_space<vmem>>, vector<8x256xf32>,
    return
  }
  func.func @transform_0(%arg0: i32, %arg1: i32) -> (i32, i32) {
    %c0_i32 = arith.constant 0 : i32
    %c0_i32_0 = arith.constant 0 : i32
    return %arg0, %c0_i32 : i32, i32
  }
  func.func @transform_1(%arg0: i32, %arg1: i32) -> (i32, i32) {
    %c0_i32 = arith.constant 0 : i32
    %c0_i32_0 = arith.constant 0 : i32
    return %arg0, %c0_i32 : i32, i32
  }
  func.func @transform_2(%arg0: i32, %arg1: i32) -> (i32, i32) {
    %c0_i32 = arith.constant 0 : i32
    return %arg0, %arg1 : i32, i32
  }
  func.func @transform_3(%arg0: i32, %arg1: i32) -> (i32, i32) {
    %c0_i32 = arith.constant 0 : i32
    return %arg0, %arg1 : i32, i32
  }
}

</mosaic_0001>

<bundles_post_ra>
// kernel: tpu_custom_call.1
= control target key start
LH: loop header
LB: loop body
LE: loop exit
PB: predicated region body
PF: predicated region fallthrough
CT: control target
= control target key end

     0   :  { %s122_s0 = inlined_call_operand.vmem [shape: f32[8,1], index: 0, kind: input, shape index: {}]   ;;  %s123_s1 = inlined_call_operand.vmem [shape: f32[8,1], index: 1, kind: input, shape index: {}]   ;;  %s124_s2 = inlined_call_operand.vmem [shape: f32[8,256], index: 2, kind: input, shape index: {}]   ;;  %s125_s3 = inlined_call_operand.hbm [shape: f32[8,256], index: 3, kind: output, shape index: {}]  }
   0x1   :  { %v17_v0 = vld [vmem:[%s122_s0] sm:$0xff] }
   0x2   :  { %8 = vsyncpa [#allocation3], 0  ;;  %v76_v1 = vmov 0   ;;  %v25_v2 = vld [vmem:[%s123_s1] sm:$0xff]  ;;  %v16_v5 = vld [vmem:[%s124_s2 + $0x8] sm:$0xff]  ;;  %s77_s20 = smov [#allocation2]  }
   0x3   :  { %51 = vset.pattern.permute.xlu0 %v76_v1  ;;  %v15_v4 = vld [vmem:[%s124_s2] sm:$0xff]  ;;  %s41_s0 = sshll.u32 %s77_s20, 4  ;;  %s42_s0 = int_to_ptr.vmem [resolvable:$true] %s41_s0 }
   0x4   :  { %20 = vperm.xlu0 %51, %v17_v0   ;;  %s52_s1 = scalar_lea.vmem %s42_s0, 256  ;;  %p57_p1 = scmp.lt.s32.totalorder %s42_s0, %s42_s0 }
   0x5   :  { %p53_p0 = scmp.ne.s32.totalorder %s42_s0, %s52_s1  ;;  %p58_p2 = scmp.lt.s32.totalorder %s52_s1, %s52_s1 }
   0x7   :  { %p59_p3 = por %p58_p2, %p57_p1 }
   0x8   :  { %28 = vperm.xlu0 %51, %v25_v2  }
   0x9   :  { %p60_p4 = pnand %p59_p3, %p53_p0 }
  0x83   :  { %v21_v3 = vpop.permute.xlu0 %20 }
  0x84   :  { %v23_v6 = vmul.f32 %v21_v3, %v15_v4  ;;  %v24_v7 = vmul.f32 %v21_v3, %v16_v5 }
  0x87   :  { %v29_v8 = vpop.permute.xlu0 %28 }
  0x88   :  { %v31_v9 = vadd.f32 %v29_v8, %v23_v6  ;;  %v32_v10 = vadd.f32 %v29_v8, %v24_v7 }
  0x8a   :  { %33 = vst [vmem:[#allocation2] sm:$0xff] %v31_v9  ;;  %34 = vst [vmem:[#allocation2 + $0x8] sm:$0xff] %v32_v10 }
  0x8b   :  { %63 = shalt.err (!%p60_p4)
}
  0x8c   :  { %s64_s2 = scalar_lea.hbm %s125_s3, 256 }
  0x8d   :  { %p65_p5 = scmp.ne.s32.totalorder %s125_s3, %s64_s2  ;;  %p68_p6 = scmp.lt.u32.totalorder %s64_s2, %s125_s3 }
  0x8f   :  { %p70_p7 = pnand %p68_p6, %p65_p5 }
  0x91   :  { %73 = shalt.err (!%p70_p7)
}
  0x92   :  { %44 = dma.vmem_to_hbm [thread:$0]  %s42_s0, 256, %s125_s3, [#allocation3]  }
  0x93   :  { %74 = dma.done.wait [#allocation3], 256  }
  0x94   :  { %75 = vsyncadd [#allocation3], 4294967040 }
  0x95   :  { %48 = vsyncpa [#allocation3], 1 }

</bundles_post_ra>
